<compile_context>
chip_gen: v6e
topology: v6e:2x2x1
jax: 0.10.0
libtpu: 0.0.40
codegen_flags: <defaults>
</compile_context>

<pallas_src>
import jax
import jax.numpy as jnp
from jax.experimental import pallas as pl
from jax.experimental.pallas import tpu as pltpu

BN_EPS = 1e-5
NORM_EPS = 1e-12          # guard against all-zero feature rows
OUT_PAD = 128             # lane-dense padded width for the 3-class output
NUM_CLASSES = 3


def clipve_kernel(img_ref, txt_ref, w1_ref, w2_ref, w3_ref, bias_ref, out_ref):
    """One batch tile. w1/w3 already have BN0/BN1 folded in; bias_ref rows are
    [b1 | b2 | b3(lane-padded)]; the output is lane-padded to OUT_PAD."""
    img = img_ref[...].astype(jnp.float32)
    txt = txt_ref[...].astype(jnp.float32)

    D = img.shape[-1]
    H1 = w2_ref.shape[0]
    H2 = w2_ref.shape[1]

    # L2-normalize along the feature axis (rsqrt -> EUP slot, no division).
    img = img * jax.lax.rsqrt(
        jnp.maximum(jnp.sum(img * img, axis=-1, keepdims=True), NORM_EPS))
    txt = txt * jax.lax.rsqrt(
        jnp.maximum(jnp.sum(txt * txt, axis=-1, keepdims=True), NORM_EPS))

    # dropout(p=0.1) is identity in eval mode.
    #
    # combined = [img, txt, |img-txt|, img*txt]; instead of a lane-axis concat
    # (XLU packing), fc1 is a sum of four row-block matmuls.  BN0 is folded
    # into w1/b1 offline.
    b1 = bias_ref[0:1, 0:H1]
    x = (jnp.dot(img, w1_ref[0:D, :], preferred_element_type=jnp.float32)
         + jnp.dot(txt, w1_ref[D:2 * D, :], preferred_element_type=jnp.float32)
         + jnp.dot(jnp.abs(img - txt), w1_ref[2 * D:3 * D, :],
                   preferred_element_type=jnp.float32)
         + jnp.dot(img * txt, w1_ref[3 * D:4 * D, :],
                   preferred_element_type=jnp.float32)
         + b1)
    x = jnp.maximum(x, 0.0)

    # fc2 + relu
    b2 = bias_ref[1:2, 0:H2]
    x = jnp.dot(x, w2_ref[...], preferred_element_type=jnp.float32) + b2
    x = jnp.maximum(x, 0.0)

    # fc3 (BN1 folded into w3/b3; zero-padded to OUT_PAD for a dense store)
    b3 = bias_ref[2:3, :]
    out = jnp.dot(x, w3_ref[...], preferred_element_type=jnp.float32) + b3
    out_ref[...] = out.astype(out_ref.dtype)


def fold_params(p):
    """Fold inference BatchNorms into the neighbouring Linears, lane-pad fc3,
    and pack the three bias vectors into one operand."""
    H1 = p["w1"].shape[1]
    H2 = p["w2"].shape[1]
    assert max(H1, H2, NUM_CLASSES) <= OUT_PAD

    # bn0 folded into fc1:  (x*s0 + t0) @ W1 + b1 == x @ (s0.T * W1) + (t0@W1 + b1)
    s0 = p["bn0_gamma"] * jax.lax.rsqrt(p["bn0_var"] + BN_EPS)      # (1, 4D)
    t0 = p["bn0_beta"] - p["bn0_mean"] * s0
    w1f = p["w1"] * s0.T
    b1f = p["b1"] + t0 @ p["w1"]

    # bn1 folded into fc3
    s1 = p["bn1_gamma"] * jax.lax.rsqrt(p["bn1_var"] + BN_EPS)      # (1, H2)
    t1 = p["bn1_beta"] - p["bn1_mean"] * s1
    w3f = p["w3"] * s1.T
    b3f = p["b3"] + t1 @ p["w3"]

    # lane-dense pad of fc3: output written as (B, OUT_PAD), sliced in wrapper
    w3p = jnp.zeros((H2, OUT_PAD), jnp.float32).at[:, :NUM_CLASSES].set(w3f)

    # pack biases: row0 = b1, row1 = b2, row2 = b3 (all zero-padded on lanes)
    bias = jnp.zeros((3, OUT_PAD), jnp.float32)
    bias = bias.at[0, :H1].set(b1f[0])
    bias = bias.at[1, :H2].set(p["b2"][0])
    bias = bias.at[2, :NUM_CLASSES].set(b3f[0])

    return {"w1": w1f, "w2": p["w2"], "w3": w3p, "bias": bias}


def clipve_forward(image_features, text_features, kp):
    """image_features, text_features: [B, D] float32. Returns [B, 3]."""
    B, D = image_features.shape

    # Batch tile: everything-resident single tile at small B; pipelined /
    # core-parallel tiles at production batch sizes.
    TB = B if B <= 256 else 256
    assert B % TB == 0, "batch must be a multiple of the batch tile"
    grid = (B // TB,)

    def resident(shape):
        return pl.BlockSpec(shape, lambda i: (0, 0))

    out = pl.pallas_call(
        clipve_kernel,
        out_shape=jax.ShapeDtypeStruct((B, OUT_PAD), jnp.float32),
        grid=grid,
        in_specs=[
            pl.BlockSpec((TB, D), lambda i: (i, 0)),   # image features
            pl.BlockSpec((TB, D), lambda i: (i, 0)),   # text  features
            resident(kp["w1"].shape),                  # (4D, H1)  bn0-folded
            resident(kp["w2"].shape),                  # (H1, H2)
            resident(kp["w3"].shape),                  # (H2, OUT_PAD) bn1-folded
            resident(kp["bias"].shape),                # (3, OUT_PAD) packed biases
        ],
        out_specs=pl.BlockSpec((TB, OUT_PAD), lambda i: (i, 0)),
        compiler_params=pltpu.CompilerParams(
            dimension_semantics=("parallel",)),
    )(image_features, text_features, kp["w1"], kp["w2"], kp["w3"], kp["bias"])
    return out[:, :NUM_CLASSES]


def make_params(key, input_dim, hidden1, hidden2):
    """Raw (un-folded) parameters, mirroring the PyTorch module."""
    input_size = input_dim * 4
    ks = jax.random.split(key, 14)

    def n(k, shape, scale):
        return scale * jax.random.normal(k, shape, jnp.float32)

    return {
        # BatchNorm1d with non-trivial running stats (inference mode)
        "bn0_gamma": 1.0 + n(ks[0], (1, input_size), 0.1),
        "bn0_beta": n(ks[1], (1, input_size), 0.1),
        "bn0_mean": n(ks[2], (1, input_size), 0.1),
        "bn0_var": 1.0 + jax.random.uniform(ks[3], (1, input_size), jnp.float32),
        "bn1_gamma": 1.0 + n(ks[4], (1, hidden2), 0.1),
        "bn1_beta": n(ks[5], (1, hidden2), 0.1),
        "bn1_mean": n(ks[6], (1, hidden2), 0.1),
        "bn1_var": 1.0 + jax.random.uniform(ks[7], (1, hidden2), jnp.float32),
        # Linear layers, stored as [in, out] (transposed vs PyTorch)
        "w1": n(ks[8], (input_size, hidden1), 0.05),
        "b1": n(ks[9], (1, hidden1), 0.01),
        "w2": n(ks[10], (hidden1, hidden2), 0.05),
        "b2": n(ks[11], (1, hidden2), 0.01),
        "w3": n(ks[12], (hidden2, NUM_CLASSES), 0.05),
        "b3": n(ks[13], (1, NUM_CLASSES), 0.01),
    }


def reference_forward(img, txt, p):
    """Plain-JAX reference (un-folded params) for correctness checking."""
    img = img / jnp.linalg.norm(img, axis=-1, keepdims=True)
    txt = txt / jnp.linalg.norm(txt, axis=-1, keepdims=True)
    c = jnp.concatenate([img, txt, jnp.abs(img - txt), img * txt], axis=-1)
    x = (c - p["bn0_mean"]) / jnp.sqrt(p["bn0_var"] + BN_EPS) * p["bn0_gamma"] + p["bn0_beta"]
    x = jnp.maximum(x @ p["w1"] + p["b1"], 0.0)
    x = jnp.maximum(x @ p["w2"] + p["b2"], 0.0)
    x = (x - p["bn1_mean"]) / jnp.sqrt(p["bn1_var"] + BN_EPS) * p["bn1_gamma"] + p["bn1_beta"]
    return x @ p["w3"] + p["b3"]


if __name__ == "__main__":
    # TODO(synk): the pretrained CLIP text encoder (self.clip) has no clean
    # Pallas equivalent here; its projected output `text_embeds` is supplied
    # directly as the `text_features` input.
    B, D = 8, 32          # batch, input_dim (== CLIP projection dim)
    H1, H2 = 64, 32       # hidden_size1, hidden_size2

    key = jax.random.PRNGKey(0)
    k_img, k_txt, k_par = jax.random.split(key, 3)
    image_features = jax.random.normal(k_img, (B, D), jnp.float32)
    text_features = jax.random.normal(k_txt, (B, D), jnp.float32)

    params = make_params(k_par, D, H1, H2)
    kernel_params = fold_params(params)   # offline BN folding / padding / packing

    out = clipve_forward(image_features, text_features, kernel_params)
    out = jax.block_until_ready(out)

    ref = reference_forward(image_features, text_features, params)
    assert out.shape == (B, NUM_CLASSES)
    assert jnp.allclose(out, ref, atol=1e-4, rtol=1e-4), (out, ref)

    print("KERNEL_OK")
</pallas_src>

<mosaic_0001>
module attributes {stable_mosaic.version = 11 : i64} {
  func.func @clipve_kernel(%arg0: i32, %arg1: memref<8x32xf32, #tpu.memory_space<vmem>>, %arg2: memref<8x32xf32, #tpu.memory_space<vmem>>, %arg3: memref<128x64xf32, #tpu.memory_space<vmem>>, %arg4: memref<64x32xf32, #tpu.memory_space<vmem>>, %arg5: memref<32x128xf32, #tpu.memory_space<vmem>>, %arg6: memref<3x128xf32, #tpu.memory_space<vmem>>, %arg7: memref<8x128xf32, #tpu.memory_space<vmem>>) attributes {dimension_semantics = [#tpu.dimension_semantics<parallel>], iteration_bounds = array<i64: 1>, scalar_prefetch = 0 : i64, scratch_operands = 0 : i64, tpu.core_type = #tpu.core_type<tc>, window_params = [{transform_indices = @transform_0, window_bounds = array<i64: 8, 32>}, {transform_indices = @transform_1, window_bounds = array<i64: 8, 32>}, {pipeline_mode = #tpu.pipeline_mode<synchronous>, transform_indices = @transform_2, window_bounds = array<i64: 128, 64>}, {pipeline_mode = #tpu.pipeline_mode<synchronous>, transform_indices = @transform_3, window_bounds = array<i64: 64, 32>}, {pipeline_mode = #tpu.pipeline_mode<synchronous>, transform_indices = @transform_4, window_bounds = array<i64: 32, 128>}, {pipeline_mode = #tpu.pipeline_mode<synchronous>, transform_indices = @transform_5, window_bounds = array<i64: 3, 128>}, {transform_indices = @transform_6, window_bounds = array<i64: 8, 128>}]} {
    %c0 = arith.constant 0 : index
    %c0_0 = arith.constant 0 : index
    %0 = vector.load %arg1[%c0, %c0_0] : memref<8x32xf32, #tpu.memory_space<vmem>>, vector<8x32xf32>
    %c0_1 = arith.constant 0 : index
    %c0_2 = arith.constant 0 : index
    %1 = vector.load %arg2[%c0_1, %c0_2] : memref<8x32xf32, #tpu.memory_space<vmem>>, vector<8x32xf32>
    %2 = arith.mulf %0, %0 : vector<8x32xf32>
    %cst = arith.constant dense<0.000000e+00> : vector<8xf32>
    %3 = vector.multi_reduction <add>, %2, %cst [1] : vector<8x32xf32> to vector<8xf32>
    %4 = vector.shape_cast %3 : vector<8xf32> to vector<8x1xf32>
    %cst_3 = arith.constant 9.99999996E-13 : f32
    %5 = vector.broadcast %cst_3 : f32 to vector<8x1xf32>
    %6 = arith.maximumf %4, %5 : vector<8x1xf32>
    %7 = math.rsqrt %6 : vector<8x1xf32>
    %8 = vector.broadcast %7 : vector<8x1xf32> to vector<8x32xf32>
    %9 = arith.mulf %0, %8 : vector<8x32xf32>
    %10 = arith.mulf %1, %1 : vector<8x32xf32>
    %cst_4 = arith.constant dense<0.000000e+00> : vector<8xf32>
    %11 = vector.multi_reduction <add>, %10, %cst_4 [1] : vector<8x32xf32> to vector<8xf32>
    %12 = vector.shape_cast %11 : vector<8xf32> to vector<8x1xf32>
    %cst_5 = arith.constant 9.99999996E-13 : f32
    %13 = vector.broadcast %cst_5 : f32 to vector<8x1xf32>
    %14 = arith.maximumf %12, %13 : vector<8x1xf32>
    %15 = math.rsqrt %14 : vector<8x1xf32>
    %16 = vector.broadcast %15 : vector<8x1xf32> to vector<8x32xf32>
    %17 = arith.mulf %1, %16 : vector<8x32xf32>
    %c0_6 = arith.constant 0 : index
    %c0_7 = arith.constant 0 : index
    %18 = vector.load %arg6[%c0_6, %c0_7] : memref<3x128xf32, #tpu.memory_space<vmem>>, vector<1x64xf32>
    %c0_8 = arith.constant 0 : index
    %c0_9 = arith.constant 0 : index
    %19 = vector.load %arg3[%c0_8, %c0_9] : memref<128x64xf32, #tpu.memory_space<vmem>>, vector<32x64xf32>
    %cst_10 = arith.constant dense<0.000000e+00> : vector<8x64xf32>
    %20 = tpu.matmul %9, %19, %cst_10 {dimension_numbers = #tpu.dot_dimension_numbers<[1], [0], [0], [1], [0, 0, 1, 1], [], []>} : vector<8x32xf32>, vector<32x64xf32>, vector<8x64xf32> -> vector<8x64xf32>
    %c32 = arith.constant 32 : index
    %c0_11 = arith.constant 0 : index
    %21 = vector.load %arg3[%c32, %c0_11] : memref<128x64xf32, #tpu.memory_space<vmem>>, vector<32x64xf32>
    %cst_12 = arith.constant dense<0.000000e+00> : vector<8x64xf32>
    %22 = tpu.matmul %17, %21, %cst_12 {dimension_numbers = #tpu.dot_dimension_numbers<[1], [0], [0], [1], [0, 0, 1, 1], [], []>} : vector<8x32xf32>, vector<32x64xf32>, vector<8x64xf32> -> vector<8x64xf32>
    %23 = arith.addf %20, %22 : vector<8x64xf32>
    %24 = arith.subf %9, %17 : vector<8x32xf32>
    %25 = math.absf %24 : vector<8x32xf32>
    %c64 = arith.constant 64 : index
    %c0_13 = arith.constant 0 : index
    %26 = vector.load %arg3[%c64, %c0_13] : memref<128x64xf32, #tpu.memory_space<vmem>>, vector<32x64xf32>
    %cst_14 = arith.constant dense<0.000000e+00> : vector<8x64xf32>
    %27 = tpu.matmul %25, %26, %cst_14 {dimension_numbers = #tpu.dot_dimension_numbers<[1], [0], [0], [1], [0, 0, 1, 1], [], []>} : vector<8x32xf32>, vector<32x64xf32>, vector<8x64xf32> -> vector<8x64xf32>
    %28 = arith.addf %23, %27 : vector<8x64xf32>
    %29 = arith.mulf %9, %17 : vector<8x32xf32>
    %c96 = arith.constant 96 : index
    %c0_15 = arith.constant 0 : index
    %30 = vector.load %arg3[%c96, %c0_15] : memref<128x64xf32, #tpu.memory_space<vmem>>, vector<32x64xf32>
    %cst_16 = arith.constant dense<0.000000e+00> : vector<8x64xf32>
    %31 = tpu.matmul %29, %30, %cst_16 {dimension_numbers = #tpu.dot_dimension_numbers<[1], [0], [0], [1], [0, 0, 1, 1], [], []>} : vector<8x32xf32>, vector<32x64xf32>, vector<8x64xf32> -> vector<8x64xf32>
    %32 = arith.addf %28, %31 : vector<8x64xf32>
    %33 = vector.broadcast %18 : vector<1x64xf32> to vector<8x64xf32>
    %34 = arith.addf %32, %33 : vector<8x64xf32>
    %cst_17 = arith.constant 0.000000e+00 : f32
    %35 = vector.broadcast %cst_17 : f32 to vector<8x64xf32>
    %36 = arith.maximumf %34, %35 : vector<8x64xf32>
    %c1 = arith.constant 1 : index
    %c0_18 = arith.constant 0 : index
    %37 = vector.load %arg6[%c1, %c0_18] : memref<3x128xf32, #tpu.memory_space<vmem>>, vector<1x32xf32>
    %c0_19 = arith.constant 0 : index
    %c0_20 = arith.constant 0 : index
    %38 = vector.load %arg4[%c0_19, %c0_20] : memref<64x32xf32, #tpu.memory_space<vmem>>, vector<64x32xf32>
    %cst_21 = arith.constant dense<0.000000e+00> : vector<8x32xf32>
    %39 = tpu.matmul %36, %38, %cst_21 {dimension_numbers = #tpu.dot_dimension_numbers<[1], [0], [0], [1], [0, 0, 1, 1], [], []>} : vector<8x64xf32>, vector<64x32xf32>, vector<8x32xf32> -> vector<8x32xf32>
    %40 = vector.broadcast %37 : vector<1x32xf32> to vector<8x32xf32>
    %41 = arith.addf %39, %40 : vector<8x32xf32>
    %cst_22 = arith.constant 0.000000e+00 : f32
    %42 = vector.broadcast %cst_22 : f32 to vector<8x32xf32>
    %43 = arith.maximumf %41, %42 : vector<8x32xf32>
    %c2 = arith.constant 2 : index
    %c0_23 = arith.constant 0 : index
    %44 = vector.load %arg6[%c2, %c0_23] : memref<3x128xf32, #tpu.memory_space<vmem>>, vector<1x128xf32>
    %c0_24 = arith.constant 0 : index
    %c0_25 = arith.constant 0 : index
    %45 = vector.load %arg5[%c0_24, %c0_25] : memref<32x128xf32, #tpu.memory_space<vmem>>, vector<32x128xf32>
    %cst_26 = arith.constant dense<0.000000e+00> : vector<8x128xf32>
    %46 = tpu.matmul %43, %45, %cst_26 {dimension_numbers = #tpu.dot_dimension_numbers<[1], [0], [0], [1], [0, 0, 1, 1], [], []>} : vector<8x32xf32>, vector<32x128xf32>, vector<8x128xf32> -> vector<8x128xf32>
    %47 = vector.broadcast %44 : vector<1x128xf32> to vector<8x128xf32>
    %48 = arith.addf %46, %47 : vector<8x128xf32>
    %c0_27 = arith.constant 0 : index
    %c0_28 = arith.constant 0 : index
    %49 = vector.load %arg7[%c0_27, %c0_28] : memref<8x128xf32, #tpu.memory_space<vmem>>, vector<8x128xf32>
    tpu.vector_store %arg7[%c0_27, %c0_28], %48 {strides = array<i32>} : memref<8x128xf32, #tpu.memory_space<vmem>>, vector<8x128xf32>,
    return
  }
  func.func @transform_0(%arg0: i32) -> (i32, i32) {
    %c0_i32 = arith.constant 0 : i32
    %c0_i32_0 = arith.constant 0 : i32
    return %arg0, %c0_i32 : i32, i32
  }
  func.func @transform_1(%arg0: i32) -> (i32, i32) {
    %c0_i32 = arith.constant 0 : i32
    %c0_i32_0 = arith.constant 0 : i32
    return %arg0, %c0_i32 : i32, i32
  }
  func.func @transform_2(%arg0: i32) -> (i32, i32) {
    %c0_i32 = arith.constant 0 : i32
    %c0_i32_0 = arith.constant 0 : i32
    %c0_i32_1 = arith.constant 0 : i32
    return %c0_i32, %c0_i32_0 : i32, i32
  }
  func.func @transform_3(%arg0: i32) -> (i32, i32) {
    %c0_i32 = arith.constant 0 : i32
    %c0_i32_0 = arith.constant 0 : i32
    %c0_i32_1 = arith.constant 0 : i32
    return %c0_i32, %c0_i32_0 : i32, i32
  }
  func.func @transform_4(%arg0: i32) -> (i32, i32) {
    %c0_i32 = arith.constant 0 : i32
    %c0_i32_0 = arith.constant 0 : i32
    %c0_i32_1 = arith.constant 0 : i32
    return %c0_i32, %c0_i32_0 : i32, i32
  }
  func.func @transform_5(%arg0: i32) -> (i32, i32) {
    %c0_i32 = arith.constant 0 : i32
    %c0_i32_0 = arith.constant 0 : i32
    %c0_i32_1 = arith.constant 0 : i32
    return %c0_i32, %c0_i32_0 : i32, i32
  }
  func.func @transform_6(%arg0: i32) -> (i32, i32) {
    %c0_i32 = arith.constant 0 : i32
    %c0_i32_0 = arith.constant 0 : i32
    return %arg0, %c0_i32 : i32, i32
  }
}

</mosaic_0001>

<bundles_post_ra>
// kernel: tpu_custom_call.1
= control target key start
LH: loop header
LB: loop body
LE: loop exit
PB: predicated region body
PF: predicated region fallthrough
CT: control target
= control target key end

     0   :  { %vm27_vm0 = vcmask 261120   ;;  %s879_s0 = inlined_call_operand.vmem [shape: f32[8,32], index: 0, kind: input, shape index: {}]   ;;  %s880_s1 = inlined_call_operand.vmem [shape: f32[8,32], index: 1, kind: input, shape index: {}]   ;;  %s881_s2 = inlined_call_operand.vmem [shape: f32[128,64], index: 2, kind: input, shape index: {}]   ;;  %s882_s3 = inlined_call_operand.vmem [shape: f32[64,32], index: 3, kind: input, shape index: {}]   ;;  %s883_s4 = inlined_call_operand.vmem [shape: f32[32,128], index: 4, kind: input, shape index: {}]   ;;  %s884_s5 = inlined_call_operand.vmem [shape: f32[3,128], index: 5, kind: input, shape index: {}]   ;;  %s885_s6 = inlined_call_operand.hbm [shape: f32[8,128], index: 6, kind: output, shape index: {}]  }
   0x1   :  { %v25_v0 = vld [vmem:[%s880_s1] sm:$0xff] }
   0x2   :  { %v24_v1 = vld [vmem:[%s879_s0] sm:$0xff] }
   0x3   :  { %11 = vsyncpa [#allocation3], 0  ;;  %v34_v2 = vmul.f32 %v25_v0, %v25_v0  ;;  %v26_v3 = vmul.f32 %v24_v1, %v24_v1  ;;  %v49_v6 = vld [vmem:[%s881_s2 + $0x38] sm:$0xff]  ;;  %v692_v8 = vmov 0.0   ;;  %v48_v9 = vld [vmem:[%s881_s2 + $0x30] sm:$0xff]  ;;  %vm693_vm1 = vmmov 0  }
   0x4   :  { %v45_v7 = vld [vmem:[%s881_s2 + $0x18] sm:$0xff]  ;;  %589 = vmatprep.subr.mxu0 %v692_v8  ;;  %600 = vmatprep.subr.mxu1 %v692_v8  ;;  %v44_v10 = vld [vmem:[%s881_s2 + $0x10] sm:$0xff]  ;;  %v47_v11 = vld [vmem:[%s881_s2 + $0x28] sm:$0xff]  ;;  %vm374_vm2 = vcmask 523264   ;;  %s694_s30 = smov [#allocation2]  }
   0x5   :  { %v35_v4 = vsel %vm27_vm0, %v34_v2, 0.0  ;;  %v28_v5 = vsel %vm27_vm0, %v26_v3, 0.0  ;;  %590 = vmatpush3.msra.mxu0 %v49_v6  ;;  %601 = vmatpush3.msra.mxu1 %v45_v7  ;;  %v46_v12 = vld [vmem:[%s881_s2 + $0x20] sm:$0xff]  ;;  %v43_v13 = vld [vmem:[%s881_s2 + $0x8] sm:$0xff]  ;;  %v201_v21 = vld [vmem:[%s881_s2 + $0x58] sm:$0xff]  ;;  %s538_s7 = sshll.u32 %s694_s30, 4  ;;  %s539_s7 = int_to_ptr.vmem [resolvable:$true] %s538_s7 }
   0x6   :  { %36 = vadd.xlane.f32.xlu0 %v35_v4  ;;  %591 = vmatprep.subr.mxu0 %v692_v8  ;;  %v42_v14 = vld [vmem:[%s881_s2] sm:$0xff]  ;;  %v200_v22 = vld [vmem:[%s881_s2 + $0x50] sm:$0xff]  ;;  %v280_v25 = vld [vmem:[%s881_s2 + $0x78] sm:$0xff]  ;;  %p675_p1 = scmp.lt.s32.totalorder %s539_s7, %s539_s7 }
   0x7   :  { %602 = vmatprep.subr.mxu1 %v692_v8  ;;  %592 = vmatpush3.msra.mxu0 %v48_v9  ;;  %v199_v26 = vld [vmem:[%s881_s2 + $0x48] sm:$0xff]  ;;  %v279_v28 = vld [vmem:[%s881_s2 + $0x70] sm:$0xff]  ;;  %v198_v29 = vld [vmem:[%s881_s2 + $0x40] sm:$0xff] }
   0x8   :  { %603 = vmatpush3.msra.mxu1 %v44_v10  ;;  %593 = vmatprep.subr.mxu0 %v692_v8  ;;  %v278_v31 = vld [vmem:[%s881_s2 + $0x68] sm:$0xff]  ;;  %v277_v32 = vld [vmem:[%s881_s2 + $0x60] sm:$0xff]  ;;  %v369_v34 = vld [vmem:[%s882_s3 + $0x38] sm:$0xff] }
   0x9   :  { %597 = vmatprep.mubr.msk.f32.mxu0 %vm693_vm1, %v692_v8  ;;  %594 = vmatpush3.msra.mxu0 %v47_v11  ;;  %v368_v35 = vld [vmem:[%s882_s3 + $0x30] sm:$0xff]  ;;  %v367_v36 = vld [vmem:[%s882_s3 + $0x28] sm:$0xff]  ;;  %v366_v37 = vld [vmem:[%s882_s3 + $0x20] sm:$0xff] }
   0xa   :  { %29 = vadd.xlane.f32.xlu0 %v28_v5  ;;  %604 = vmatprep.subr.mxu1 %v692_v8  ;;  %v365_v38 = vld [vmem:[%s882_s3 + $0x18] sm:$0xff]  ;;  %v364_v39 = vld [vmem:[%s882_s3 + $0x10] sm:$0xff]  ;;  %v363_v40 = vld [vmem:[%s882_s3 + $0x8] sm:$0xff] }
   0xb   :  { %595 = vmatprep.subr.mxu0 %v692_v8  ;;  %608 = vmatprep.mubr.msk.f32.mxu1 %vm693_vm1, %v692_v8  ;;  %v362_v41 = vld [vmem:[%s882_s3] sm:$0xff]  ;;  %v453_v42 = vld [vmem:[%s883_s4 + $0x18] sm:$0xff]  ;;  %v452_v57 = vld [vmem:[%s883_s4 + $0x10] sm:$0xff] }
   0xc   :  { %596 = vmatpush3.msra.mxu0 %v46_v12  ;;  %605 = vmatpush3.msra.mxu1 %v43_v13  ;;  %v550_v51 = vld [vmem:[%s884_s5] ss:$0 sm:$0xff]  ;;  %v451_v58 = vld [vmem:[%s883_s4 + $0x8] sm:$0xff]  ;;  %v551_v60 = vld [vmem:[%s884_s5 + $0x1] ss:$0 sm:$0xff] }
   0xd   :  { %611 = vmatprep.subr.mxu0 %v692_v8  ;;  %606 = vmatprep.subr.mxu1 %v692_v8  ;;  %v450_v59 = vld [vmem:[%s883_s4] sm:$0xff]  ;;  %s670_s4 = scalar_lea.vmem %s539_s7, 128 }
   0xe   :  { %607 = vmatpush3.msra.mxu1 %v42_v14  ;;  %p671_p0 = scmp.ne.s32.totalorder %s539_s7, %s670_s4  ;;  %p676_p2 = scmp.lt.s32.totalorder %s670_s4, %s670_s4 }
   0xf   :  { %622 = vmatprep.subr.mxu1 %v692_v8 }
  0x10   :  { %p677_p3 = por %p676_p2, %p675_p1 }
  0x12   :  { %p678_p4 = pnand %p677_p3, %p671_p0 }
  0x8f   :  { %v37_v15 = vpop.xlane.xlu0 %36 }
  0x90   :  { %v38_v16 = vmax.f32 %v37_v15, 1e-12 }
  0x92   :  { %666 = vrsqrt.f32 %v38_v16 }
  0x93   :  { %v30_v17 = vpop.xlane.xlu0 %29 }
  0x94   :  { %v31_v18 = vmax.f32 %v30_v17, 1e-12 }
  0x96   :  { %668 = vrsqrt.f32 %v31_v18 }
  0x9f   :  { %v667_v19 = vpop.eup %666 }
  0xa0   :  { %v40_v20 = vmul.f32 %v667_v19, %v25_v0 }
  0xa2   :  { %598 = vmatmul.mubr.msk.f32.vlgmr.msra.gmra.mxu0 %vm27_vm0, %v40_v20 }
  0xa3   :  { %v669_v23 = vpop.eup %668  ;;  %612 = vmatpush3.msra.mxu0 %v201_v21  ;;  %619 = vmatprep.mubr.msk.f32.mxu0 %vm693_vm1, %v692_v8 }
  0xa4   :  { %613 = vmatprep.subr.mxu0 %v692_v8  ;;  %v33_v24 = vmul.f32 %v669_v23, %v24_v1  ;;  %v553_v1 = vld [vmem:[%s884_s5 + $0x2] ss:$0 sm:$0xff] }
  0xa5   :  { %614 = vmatpush3.msra.mxu0 %v200_v22 }
  0xa6   :  { %609 = vmatmul.mubr.msk.f32.vlgmr.msra.gmra.mxu1 %vm27_vm0, %v33_v24  ;;  %v196_v27 = vsub.f32 %v33_v24, %v40_v20  ;;  %615 = vmatprep.subr.mxu0 %v692_v8  ;;  %v276_v33 = vmul.f32 %v40_v20, %v33_v24 }
  0xa7   :  { %623 = vmatpush3.msra.mxu1 %v280_v25  ;;  %616 = vmatpush3.msra.mxu0 %v199_v26 }
  0xa8   :  { %624 = vmatprep.subr.mxu1 %v692_v8  ;;  %617 = vmatprep.subr.mxu0 %v692_v8  ;;  %v197_v30 = vand.u32 2147483647, %v196_v27 }
  0xa9   :  { %625 = vmatpush3.msra.mxu1 %v279_v28  ;;  %618 = vmatpush3.msra.mxu0 %v198_v29 }
  0xaa   :  { %626 = vmatprep.subr.mxu1 %v692_v8  ;;  %620 = vmatmul.mubr.msk.f32.vlgmr.msra.gmra.mxu0 %vm27_vm0, %v197_v30 }
  0xab   :  { %627 = vmatpush3.msra.mxu1 %v278_v31  ;;  %630 = vmatprep.mubr.msk.f32.mxu1 %vm693_vm1, %v692_v8 }
  0xac   :  { %628 = vmatprep.subr.mxu1 %v692_v8  ;;  %633 = vmatprep.subr.mxu0 %v692_v8 }
  0xad   :  { %629 = vmatpush3.msra.mxu1 %v277_v32  ;;  %649 = vmatprep.mubr.msk.f32.mxu0 %vm693_vm1, %v692_v8 }
  0xae   :  { %631 = vmatmul.mubr.msk.f32.vlgmr.msra.gmra.mxu1 %vm27_vm0, %v276_v33  ;;  %652 = vmatprep.subr.mxu1 %v692_v8 }
  0xaf   :  { %660 = vmatprep.mubr.msk.f32.mxu1 %vm693_vm1, %v692_v8  ;;  %634 = vmatpush3.msra.mxu0 %v369_v34 }
  0xb0   :  { %635 = vmatprep.subr.mxu0 %v692_v8  ;;  %653 = vmatpush3.msra.mxu1 %v453_v42 }
  0xb1   :  { %636 = vmatpush3.msra.mxu0 %v368_v35  ;;  %654 = vmatprep.subr.mxu1 %v692_v8 }
  0xb2   :  { %637 = vmatprep.subr.mxu0 %v692_v8  ;;  %655 = vmatpush3.msra.mxu1 %v452_v57 }
  0xb3   :  { %638 = vmatpush3.msra.mxu0 %v367_v36  ;;  %656 = vmatprep.subr.mxu1 %v692_v8 }
  0xb4   :  { %639 = vmatprep.subr.mxu0 %v692_v8  ;;  %657 = vmatpush3.msra.mxu1 %v451_v58 }
  0xb5   :  { %640 = vmatpush3.msra.mxu0 %v366_v37  ;;  %658 = vmatprep.subr.mxu1 %v692_v8 }
  0xb6   :  { %641 = vmatprep.subr.mxu0 %v692_v8  ;;  %659 = vmatpush3.msra.mxu1 %v450_v59 }
  0xb7   :  { %642 = vmatpush3.msra.mxu0 %v365_v38 }
  0xb8   :  { %643 = vmatprep.subr.mxu0 %v692_v8 }
  0xb9   :  { %644 = vmatpush3.msra.mxu0 %v364_v39 }
  0xba   :  { %645 = vmatprep.subr.mxu0 %v692_v8 }
  0xbb   :  { %646 = vmatpush3.msra.mxu0 %v363_v40 }
  0xbc   :  { %647 = vmatprep.subr.mxu0 %v692_v8 }
  0xbd   :  { %648 = vmatpush3.msra.mxu0 %v362_v41 }
 0x162   :  { %v119_v43 = vpop.f32.mrf.mxu0 }
 0x164   :  { %v599_v44 = vpop.f32.mrf.mxu0 }
 0x166   :  { %v192_v45 = vpop.f32.mrf.mxu1 }
 0x167   :  { %v193_v47 = vadd.f32 %v192_v45, %v119_v43 }
 0x168   :  { %v610_v46 = vpop.f32.mrf.mxu1 }
 0x16a   :  { %v271_v48 = vpop.f32.mrf.mxu0 }
 0x16b   :  { %v275_v49 = vadd.f32 %v271_v48, %v193_v47 }
 0x16c   :  { %v621_v50 = vpop.f32.mrf.mxu0 }
 0x16e   :  { %v350_v52 = vpop.f32.mrf.mxu1 }
 0x16f   :  { %v354_v53 = vadd.f32 %v350_v52, %v275_v49 }
 0x170   :  { %v632_v54 = vpop.f32.mrf.mxu1 }
 0x171   :  { %v359_v55 = vadd.f32 %v550_v51, %v354_v53 }
 0x173   :  { %v360_v56 = vmax.f32 %v359_v55, 0.0 }
 0x175   :  { %650 = vmatmul.mubr.msk.f32.vlgmr.msra.gmra.mxu0 %vm374_vm2, %v360_v56 }
 0x235   :  { %v444_v61 = vpop.f32.mrf.mxu0 }
 0x236   :  { %v445_v62 = vadd.f32 %v551_v60, %v444_v61 }
 0x237   :  { %v651_v63 = vpop.f32.mrf.mxu0 }
 0x238   :  { %v448_v0 = vmax.f32 %v445_v62, 0.0 }
 0x23a   :  { %661 = vmatmul.mubr.msk.f32.vlgmr.msra.gmra.mxu1 %vm27_vm0, %v448_v0 }
 0x2fa   :  { %v527_v2 = vpop.f32.mrf.mxu1 }
 0x2fb   :  { %v528_v3 = vadd.f32 %v553_v1, %v527_v2 }
 0x2fc   :  { %v662_v4 = vpop.f32.mrf.mxu1 }
 0x2fd   :  { %531 = vst [vmem:[#allocation2] sm:$0xff] %v528_v3 }
 0x2fe   :  { %681 = shalt.err (!%p678_p4)
}
 0x2ff   :  { %541 = dma.vmem_to_hbm [thread:$0]  %s539_s7, 128, %s885_s6, [#allocation3]  }
 0x300   :  { %690 = dma.done.wait [#allocation3], 128  }
 0x301   :  { %691 = vsyncadd [#allocation3], 4294967168 }
 0x302   :  { %545 = vsyncpa [#allocation3], 1 }

</bundles_post_ra>
